<compile_context>
chip_gen: v7x
topology: tpu7x:2x2x1
jax: 0.10.0
libtpu: 0.0.40
codegen_flags: <defaults>
</compile_context>

<pallas_src>
import jax
import jax.numpy as jnp
from jax.experimental import pallas as pl
from jax.experimental.pallas import tpu as pltpu  # noqa: F401  (TPU backend)

EPS = 1e-5
NEG_SLOPE = 0.01

D_IN = 28 * 28          # 784 (no K padding; MXU handles the ragged K)
H1, H2, OUT = 45, 12, 10
H1P = H2P = OUTP = 128  # lane-dense padded feature widths


def _bn_leaky(h, gamma, beta):
    """Training-mode BatchNorm1d (batch stats, biased centered var) + LeakyReLU, f32."""
    mu = jnp.mean(h, axis=0, keepdims=True)
    var = jnp.mean((h - mu) * (h - mu), axis=0, keepdims=True)
    h = (h - mu) * jax.lax.rsqrt(var + EPS) * gamma + beta
    return jnp.where(h >= 0, h, NEG_SLOPE * h)


# ---------------------------------------------------------------------------
# Single fused kernel: the whole forward pass on VMEM-resident activations.
# ---------------------------------------------------------------------------
def fused_kernel(x_ref, w1_ref, b1_ref, g1_ref, be1_ref,
                 w2_ref, b2_ref, g2_ref, be2_ref,
                 w3_ref, b3_ref, o_ref):
    # Layer 1: Linear(784 -> 45, padded to 128). bf16 operands, f32 accumulation.
    h = jnp.dot(x_ref[...].astype(jnp.bfloat16), w1_ref[...],
                preferred_element_type=jnp.float32) + b1_ref[...]
    h = _bn_leaky(h, g1_ref[...], be1_ref[...])

    # Layer 2: Linear(45 -> 12, padded 128 -> 128).
    h = jnp.dot(h.astype(jnp.bfloat16), w2_ref[...],
                preferred_element_type=jnp.float32) + b2_ref[...]
    h = _bn_leaky(h, g2_ref[...], be2_ref[...])

    # Layer 3: Linear(12 -> 10, padded 128 -> 128). Output stays lane-dense.
    out = jnp.dot(h.astype(jnp.bfloat16), w3_ref[...],
                  preferred_element_type=jnp.float32) + b3_ref[...]
    o_ref[...] = out.astype(o_ref.dtype)


def prepare_params(params):
    """Pad weights to lane-dense shapes, cast matmul weights to bf16. Do once."""
    (w1, b1, g1, be1, w2, b2, g2, be2, w3, b3) = params

    def pad2(w, rows, cols):
        return jnp.zeros((rows, cols), jnp.float32).at[:w.shape[0], :w.shape[1]].set(w)

    def pad1(v, cols):
        return jnp.zeros((1, cols), jnp.float32).at[0, :v.shape[0]].set(v)

    return (
        pad2(w1, D_IN, H1P).astype(jnp.bfloat16), pad1(b1, H1P),
        pad1(g1, H1P), pad1(be1, H1P),
        pad2(w2, H1P, H2P).astype(jnp.bfloat16), pad1(b2, H2P),
        pad1(g2, H2P), pad1(be2, H2P),
        pad2(w3, H2P, OUTP).astype(jnp.bfloat16), pad1(b3, OUTP),
    )


def _resident_spec(shape):
    """Full-array block (grid=()), avoiding closure late-binding issues."""
    zeros = (0,) * len(shape)
    return pl.BlockSpec(shape, lambda: zeros)


def model_26_forward(x, prepped):
    """x: (B, 1, 28, 28) or (B, 784) float32. Returns logits (B, 10) float32."""
    B = x.shape[0]
    x2d = x.reshape(B, D_IN).astype(jnp.float32)

    args = (x2d,) + tuple(prepped)
    in_specs = [_resident_spec(a.shape) for a in args]

    out = pl.pallas_call(
        fused_kernel,
        out_shape=jax.ShapeDtypeStruct((B, OUTP), jnp.float32),
        grid=(),
        in_specs=in_specs,
        out_specs=_resident_spec((B, OUTP)),
    )(*args)

    return out[:, :OUT]   # lane-dense kernel output, sliced to the 10 logits


def init_params(key):
    """PyTorch-style defaults (Linear: U(-1/sqrt(fan_in), ..); BN: weight=1, bias=0).
    Weights stored as (in_features, out_features)."""
    def linear(key, fan_in, fan_out):
        kw, kb = jax.random.split(key)
        bound = 1.0 / jnp.sqrt(fan_in)
        w = jax.random.uniform(kw, (fan_in, fan_out), jnp.float32, -bound, bound)
        b = jax.random.uniform(kb, (fan_out,), jnp.float32, -bound, bound)
        return w, b

    k1, k2, k3 = jax.random.split(key, 3)
    w1, b1 = linear(k1, D_IN, H1)
    w2, b2 = linear(k2, H1, H2)
    w3, b3 = linear(k3, H2, OUT)
    g1, be1 = jnp.ones((H1,), jnp.float32), jnp.zeros((H1,), jnp.float32)
    g2, be2 = jnp.ones((H2,), jnp.float32), jnp.zeros((H2,), jnp.float32)
    return (w1, b1, g1, be1, w2, b2, g2, be2, w3, b3)


def reference_forward(x, params):
    """Pure-JAX reference with matching semantics (bf16 matmul operands, f32 acc)."""
    (w1, b1, g1, be1, w2, b2, g2, be2, w3, b3) = params
    h = x.reshape(x.shape[0], -1).astype(jnp.float32)

    def mm(a, w):
        return jnp.dot(a.astype(jnp.bfloat16), w.astype(jnp.bfloat16),
                       preferred_element_type=jnp.float32)

    def bn_lrelu(h, g, be):
        mu = h.mean(0, keepdims=True)
        var = ((h - mu) ** 2).mean(0, keepdims=True)
        h = (h - mu) / jnp.sqrt(var + EPS) * g + be
        return jnp.where(h >= 0, h, NEG_SLOPE * h)

    h = bn_lrelu(mm(h, w1) + b1, g1, be1)
    h = bn_lrelu(mm(h, w2) + b2, g2, be2)
    return mm(h, w3) + b3


if __name__ == "__main__":
    key = jax.random.PRNGKey(0)
    kx, kp = jax.random.split(key)

    # Small MNIST-shaped batch (BatchNorm training-mode semantics need a batch).
    B = 64
    x = jax.random.normal(kx, (B, 1, 28, 28), dtype=jnp.float32)
    params = init_params(kp)
    prepped = prepare_params(params)

    fwd = jax.jit(model_26_forward)
    out = jax.block_until_ready(fwd(x, prepped))

    ref = reference_forward(x, params)
    assert out.shape == (B, 10)
    assert jnp.allclose(out, ref, atol=1e-2, rtol=1e-2), "mismatch vs JAX reference"

    print("KERNEL_OK")
</pallas_src>

<mosaic_0001>
module attributes {stable_mosaic.version = 11 : i64} {
  func.func @fused_kernel(%arg0: memref<64x784xf32, #tpu.memory_space<vmem>>, %arg1: memref<784x128xbf16, #tpu.memory_space<vmem>>, %arg2: memref<1x128xf32, #tpu.memory_space<vmem>>, %arg3: memref<1x128xf32, #tpu.memory_space<vmem>>, %arg4: memref<1x128xf32, #tpu.memory_space<vmem>>, %arg5: memref<128x128xbf16, #tpu.memory_space<vmem>>, %arg6: memref<1x128xf32, #tpu.memory_space<vmem>>, %arg7: memref<1x128xf32, #tpu.memory_space<vmem>>, %arg8: memref<1x128xf32, #tpu.memory_space<vmem>>, %arg9: memref<128x128xbf16, #tpu.memory_space<vmem>>, %arg10: memref<1x128xf32, #tpu.memory_space<vmem>>, %arg11: memref<64x128xf32, #tpu.memory_space<vmem>>) attributes {dimension_semantics = [], scalar_prefetch = 0 : i64, scratch_operands = 0 : i64, tpu.core_type = #tpu.core_type<tc>} {
    %c0 = arith.constant 0 : index
    %c0_0 = arith.constant 0 : index
    %0 = vector.load %arg0[%c0, %c0_0] : memref<64x784xf32, #tpu.memory_space<vmem>>, vector<64x784xf32>
    %1 = arith.truncf %0 : vector<64x784xf32> to vector<64x784xbf16>
    %c0_1 = arith.constant 0 : index
    %c0_2 = arith.constant 0 : index
    %2 = vector.load %arg1[%c0_1, %c0_2] : memref<784x128xbf16, #tpu.memory_space<vmem>>, vector<784x128xbf16>
    %cst = arith.constant dense<0.000000e+00> : vector<64x128xf32>
    %3 = tpu.matmul %1, %2, %cst {dimension_numbers = #tpu.dot_dimension_numbers<[1], [0], [0], [1], [0, 0, 1, 1], [], []>} : vector<64x784xbf16>, vector<784x128xbf16>, vector<64x128xf32> -> vector<64x128xf32>
    %c0_3 = arith.constant 0 : index
    %c0_4 = arith.constant 0 : index
    %4 = vector.load %arg2[%c0_3, %c0_4] : memref<1x128xf32, #tpu.memory_space<vmem>>, vector<1x128xf32>
    %5 = vector.broadcast %4 : vector<1x128xf32> to vector<64x128xf32>
    %6 = arith.addf %3, %5 : vector<64x128xf32>
    %c0_5 = arith.constant 0 : index
    %c0_6 = arith.constant 0 : index
    %7 = vector.load %arg3[%c0_5, %c0_6] : memref<1x128xf32, #tpu.memory_space<vmem>>, vector<1x128xf32>
    %c0_7 = arith.constant 0 : index
    %c0_8 = arith.constant 0 : index
    %8 = vector.load %arg4[%c0_7, %c0_8] : memref<1x128xf32, #tpu.memory_space<vmem>>, vector<1x128xf32>
    %cst_9 = arith.constant dense<0.000000e+00> : vector<128xf32>
    %9 = vector.multi_reduction <add>, %6, %cst_9 [0] : vector<64x128xf32> to vector<128xf32>
    %10 = vector.shape_cast %9 : vector<128xf32> to vector<1x128xf32>
    %cst_10 = arith.constant 6.400000e+01 : f32
    %11 = vector.broadcast %cst_10 : f32 to vector<1x128xf32>
    %12 = arith.divf %10, %11 : vector<1x128xf32>
    %13 = vector.broadcast %12 : vector<1x128xf32> to vector<64x128xf32>
    %14 = arith.subf %6, %13 : vector<64x128xf32>
    %15 = vector.broadcast %12 : vector<1x128xf32> to vector<64x128xf32>
    %16 = arith.subf %6, %15 : vector<64x128xf32>
    %17 = arith.mulf %14, %16 : vector<64x128xf32>
    %cst_11 = arith.constant dense<0.000000e+00> : vector<128xf32>
    %18 = vector.multi_reduction <add>, %17, %cst_11 [0] : vector<64x128xf32> to vector<128xf32>
    %19 = vector.shape_cast %18 : vector<128xf32> to vector<1x128xf32>
    %cst_12 = arith.constant 6.400000e+01 : f32
    %20 = vector.broadcast %cst_12 : f32 to vector<1x128xf32>
    %21 = arith.divf %19, %20 : vector<1x128xf32>
    %22 = vector.broadcast %12 : vector<1x128xf32> to vector<64x128xf32>
    %23 = arith.subf %6, %22 : vector<64x128xf32>
    %cst_13 = arith.constant 9.99999974E-6 : f32
    %24 = vector.broadcast %cst_13 : f32 to vector<1x128xf32>
    %25 = arith.addf %21, %24 : vector<1x128xf32>
    %26 = math.rsqrt %25 : vector<1x128xf32>
    %27 = vector.broadcast %26 : vector<1x128xf32> to vector<64x128xf32>
    %28 = arith.mulf %23, %27 : vector<64x128xf32>
    %29 = vector.broadcast %7 : vector<1x128xf32> to vector<64x128xf32>
    %30 = arith.mulf %28, %29 : vector<64x128xf32>
    %31 = vector.broadcast %8 : vector<1x128xf32> to vector<64x128xf32>
    %32 = arith.addf %30, %31 : vector<64x128xf32>
    %cst_14 = arith.constant 0.000000e+00 : f32
    %33 = vector.broadcast %cst_14 : f32 to vector<64x128xf32>
    %34 = arith.cmpf oge, %32, %33 : vector<64x128xf32>
    %cst_15 = arith.constant 0.00999999977 : f32
    %35 = vector.broadcast %cst_15 : f32 to vector<64x128xf32>
    %36 = arith.mulf %35, %32 : vector<64x128xf32>
    %37 = arith.select %34, %32, %36 : vector<64x128xi1>, vector<64x128xf32>
    %38 = arith.truncf %37 : vector<64x128xf32> to vector<64x128xbf16>
    %c0_16 = arith.constant 0 : index
    %c0_17 = arith.constant 0 : index
    %39 = vector.load %arg5[%c0_16, %c0_17] : memref<128x128xbf16, #tpu.memory_space<vmem>>, vector<128x128xbf16>
    %cst_18 = arith.constant dense<0.000000e+00> : vector<64x128xf32>
    %40 = tpu.matmul %38, %39, %cst_18 {dimension_numbers = #tpu.dot_dimension_numbers<[1], [0], [0], [1], [0, 0, 1, 1], [], []>} : vector<64x128xbf16>, vector<128x128xbf16>, vector<64x128xf32> -> vector<64x128xf32>
    %c0_19 = arith.constant 0 : index
    %c0_20 = arith.constant 0 : index
    %41 = vector.load %arg6[%c0_19, %c0_20] : memref<1x128xf32, #tpu.memory_space<vmem>>, vector<1x128xf32>
    %42 = vector.broadcast %41 : vector<1x128xf32> to vector<64x128xf32>
    %43 = arith.addf %40, %42 : vector<64x128xf32>
    %c0_21 = arith.constant 0 : index
    %c0_22 = arith.constant 0 : index
    %44 = vector.load %arg7[%c0_21, %c0_22] : memref<1x128xf32, #tpu.memory_space<vmem>>, vector<1x128xf32>
    %c0_23 = arith.constant 0 : index
    %c0_24 = arith.constant 0 : index
    %45 = vector.load %arg8[%c0_23, %c0_24] : memref<1x128xf32, #tpu.memory_space<vmem>>, vector<1x128xf32>
    %cst_25 = arith.constant dense<0.000000e+00> : vector<128xf32>
    %46 = vector.multi_reduction <add>, %43, %cst_25 [0] : vector<64x128xf32> to vector<128xf32>
    %47 = vector.shape_cast %46 : vector<128xf32> to vector<1x128xf32>
    %cst_26 = arith.constant 6.400000e+01 : f32
    %48 = vector.broadcast %cst_26 : f32 to vector<1x128xf32>
    %49 = arith.divf %47, %48 : vector<1x128xf32>
    %50 = vector.broadcast %49 : vector<1x128xf32> to vector<64x128xf32>
    %51 = arith.subf %43, %50 : vector<64x128xf32>
    %52 = vector.broadcast %49 : vector<1x128xf32> to vector<64x128xf32>
    %53 = arith.subf %43, %52 : vector<64x128xf32>
    %54 = arith.mulf %51, %53 : vector<64x128xf32>
    %cst_27 = arith.constant dense<0.000000e+00> : vector<128xf32>
    %55 = vector.multi_reduction <add>, %54, %cst_27 [0] : vector<64x128xf32> to vector<128xf32>
    %56 = vector.shape_cast %55 : vector<128xf32> to vector<1x128xf32>
    %cst_28 = arith.constant 6.400000e+01 : f32
    %57 = vector.broadcast %cst_28 : f32 to vector<1x128xf32>
    %58 = arith.divf %56, %57 : vector<1x128xf32>
    %59 = vector.broadcast %49 : vector<1x128xf32> to vector<64x128xf32>
    %60 = arith.subf %43, %59 : vector<64x128xf32>
    %cst_29 = arith.constant 9.99999974E-6 : f32
    %61 = vector.broadcast %cst_29 : f32 to vector<1x128xf32>
    %62 = arith.addf %58, %61 : vector<1x128xf32>
    %63 = math.rsqrt %62 : vector<1x128xf32>
    %64 = vector.broadcast %63 : vector<1x128xf32> to vector<64x128xf32>
    %65 = arith.mulf %60, %64 : vector<64x128xf32>
    %66 = vector.broadcast %44 : vector<1x128xf32> to vector<64x128xf32>
    %67 = arith.mulf %65, %66 : vector<64x128xf32>
    %68 = vector.broadcast %45 : vector<1x128xf32> to vector<64x128xf32>
    %69 = arith.addf %67, %68 : vector<64x128xf32>
    %cst_30 = arith.constant 0.000000e+00 : f32
    %70 = vector.broadcast %cst_30 : f32 to vector<64x128xf32>
    %71 = arith.cmpf oge, %69, %70 : vector<64x128xf32>
    %cst_31 = arith.constant 0.00999999977 : f32
    %72 = vector.broadcast %cst_31 : f32 to vector<64x128xf32>
    %73 = arith.mulf %72, %69 : vector<64x128xf32>
    %74 = arith.select %71, %69, %73 : vector<64x128xi1>, vector<64x128xf32>
    %75 = arith.truncf %74 : vector<64x128xf32> to vector<64x128xbf16>
    %c0_32 = arith.constant 0 : index
    %c0_33 = arith.constant 0 : index
    %76 = vector.load %arg9[%c0_32, %c0_33] : memref<128x128xbf16, #tpu.memory_space<vmem>>, vector<128x128xbf16>
    %cst_34 = arith.constant dense<0.000000e+00> : vector<64x128xf32>
    %77 = tpu.matmul %75, %76, %cst_34 {dimension_numbers = #tpu.dot_dimension_numbers<[1], [0], [0], [1], [0, 0, 1, 1], [], []>} : vector<64x128xbf16>, vector<128x128xbf16>, vector<64x128xf32> -> vector<64x128xf32>
    %c0_35 = arith.constant 0 : index
    %c0_36 = arith.constant 0 : index
    %78 = vector.load %arg10[%c0_35, %c0_36] : memref<1x128xf32, #tpu.memory_space<vmem>>, vector<1x128xf32>
    %79 = vector.broadcast %78 : vector<1x128xf32> to vector<64x128xf32>
    %80 = arith.addf %77, %79 : vector<64x128xf32>
    %c0_37 = arith.constant 0 : index
    %c0_38 = arith.constant 0 : index
    %81 = vector.load %arg11[%c0_37, %c0_38] : memref<64x128xf32, #tpu.memory_space<vmem>>, vector<64x128xf32>
    tpu.vector_store %arg11[%c0_37, %c0_38], %80 {strides = array<i32>} : memref<64x128xf32, #tpu.memory_space<vmem>>, vector<64x128xf32>,
    return
  }
}

</mosaic_0001>

<bundles_post_ra>
// kernel: model_26_forward.1
= control target key start
LH: loop header
LB: loop body
LE: loop exit
PB: predicated region body
PF: predicated region fallthrough
CT: control target
= control target key end

     0   :  { %vm522_vm0 = vcmask 130048   ;;  %s2138_s1 = inlined_call_operand.vmem [shape: bf16[784,128], index: 1, kind: input, shape index: {}]   ;;  %s2139_s0 = inlined_call_operand.vmem [shape: f32[64,784], index: 0, kind: input, shape index: {}]   ;;  %s2140_s5 = inlined_call_operand.vmem [shape: bf16[128,128], index: 5, kind: input, shape index: {}]   ;;  %s2141_s2 = inlined_call_operand.vmem [shape: f32[1,128], index: 2, kind: input, shape index: {}]   ;;  %s2142_s3 = inlined_call_operand.vmem [shape: f32[1,128], index: 3, kind: input, shape index: {}]   ;;  %s2143_s4 = inlined_call_operand.vmem [shape: f32[1,128], index: 4, kind: input, shape index: {}]   ;;  %s2144_s9 = inlined_call_operand.vmem [shape: bf16[128,128], index: 9, kind: input, shape index: {}]   ;;  %s2145_s6 = inlined_call_operand.vmem [shape: f32[1,128], index: 6, kind: input, shape index: {}]   ;;  %s2146_s7 = inlined_call_operand.vmem [shape: f32[1,128], index: 7, kind: input, shape index: {}]   ;;  %s2147_s8 = inlined_call_operand.vmem [shape: f32[1,128], index: 8, kind: input, shape index: {}]   ;;  %s2148_s10 = inlined_call_operand.vmem [shape: f32[1,128], index: 10, kind: input, shape index: {}]   ;;  %s2149_s11 = inlined_call_operand.vmem [shape: f32[64,128], index: 11, kind: output, shape index: {}]  }
   0x1   :  { %v1587_v0 = vld [vmem:[%s2138_s1 + $0x40] sm:$0xff]   ;;  %v1591_v4 = vld [vmem:[%s2138_s1 + $0x48] sm:$0xff]   ;;  %v1595_v8 = vld [vmem:[%s2138_s1 + $0x50] sm:$0xff]  }
   0x2   :  { %v1588_v1 = vld [vmem:[%s2138_s1] sm:$0xff]   ;;  %1380 = vmatprep.subr.bf16.mxu0 %v1587_v0  ;;  %v1592_v5 = vld [vmem:[%s2138_s1 + $0x8] sm:$0xff]   ;;  %v1596_v9 = vld [vmem:[%s2138_s1 + $0x10] sm:$0xff]  }
   0x3   :  { %v1589_v2 = vld [vmem:[%s2138_s1 + $0xc0] sm:$0xff]   ;;  %1381 = vmatpush3.bf16.msra.mxu0 %v1588_v1  ;;  %v1593_v6 = vld [vmem:[%s2138_s1 + $0xc8] sm:$0xff]   ;;  %v1597_v10 = vld [vmem:[%s2138_s1 + $0xd0] sm:$0xff]  }
   0x4   :  { %v1590_v3 = vld [vmem:[%s2138_s1 + $0x80] sm:$0xff]   ;;  %1420 = vmatprep.subr.bf16.mxu1 %v1589_v2  ;;  %1382 = vmatprep.subr.bf16.mxu0 %v1591_v4  ;;  %v1594_v7 = vld [vmem:[%s2138_s1 + $0x88] sm:$0xff]   ;;  %v1598_v11 = vld [vmem:[%s2138_s1 + $0x90] sm:$0xff]  }
   0x5   :  { %1421 = vmatpush3.bf16.msra.mxu1 %v1590_v3  ;;  %v1599_v12 = vld [vmem:[%s2138_s1 + $0x58] sm:$0xff]   ;;  %v1603_v16 = vld [vmem:[%s2138_s1 + $0x60] sm:$0xff]   ;;  %v1607_v20 = vld [vmem:[%s2138_s1 + $0x68] sm:$0xff]  }
   0x6   :  { %1422 = vmatprep.subr.bf16.mxu1 %v1593_v6  ;;  %v1600_v13 = vld [vmem:[%s2138_s1 + $0x18] sm:$0xff]   ;;  %v1604_v17 = vld [vmem:[%s2138_s1 + $0x20] sm:$0xff]   ;;  %v1608_v21 = vld [vmem:[%s2138_s1 + $0x28] sm:$0xff]  }
   0x7   :  { %1383 = vmatpush3.bf16.msra.mxu0 %v1592_v5  ;;  %v1601_v14 = vld [vmem:[%s2138_s1 + $0xd8] sm:$0xff]   ;;  %v1605_v18 = vld [vmem:[%s2138_s1 + $0xe0] sm:$0xff]   ;;  %v1609_v22 = vld [vmem:[%s2138_s1 + $0xe8] sm:$0xff]  }
   0x8   :  { %1384 = vmatprep.subr.bf16.mxu0 %v1595_v8  ;;  %v1602_v15 = vld [vmem:[%s2138_s1 + $0x98] sm:$0xff]   ;;  %v1606_v19 = vld [vmem:[%s2138_s1 + $0xa0] sm:$0xff]   ;;  %v1610_v23 = vld [vmem:[%s2138_s1 + $0xa8] sm:$0xff]  }
   0x9   :  { %1423 = vmatpush3.bf16.msra.mxu1 %v1594_v7  ;;  %v1611_v24 = vld [vmem:[%s2138_s1 + $0x70] sm:$0xff]   ;;  %v1615_v28 = vld [vmem:[%s2138_s1 + $0x78] sm:$0xff]   ;;  %v40_v31 = vld [vmem:[%s2139_s0 + $0x8] sm:$0xff] }
   0xa   :  { %1424 = vmatprep.subr.bf16.mxu1 %v1597_v10  ;;  %v1612_v25 = vld [vmem:[%s2138_s1 + $0x30] sm:$0xff]   ;;  %v1616_v29 = vld [vmem:[%s2138_s1 + $0x38] sm:$0xff]   ;;  %v47_v32 = vld [vmem:[%s2139_s0 + $0x40] sm:$0xff] }
   0xb   :  { %1385 = vmatpush3.bf16.msra.mxu0 %v1596_v9  ;;  %v1613_v26 = vld [vmem:[%s2138_s1 + $0xf0] sm:$0xff]   ;;  %v1617_v30 = vld [vmem:[%s2138_s1 + $0xf8] sm:$0xff]   ;;  %v96_v33 = vpack.c.bf16 %v47_v32, %v40_v31  ;;  %v39_v35 = vld [vmem:[%s2139_s0] sm:$0xff] }
   0xc   :  { %1386 = vmatprep.subr.bf16.mxu0 %v1599_v12  ;;  %v1614_v27 = vld [vmem:[%s2138_s1 + $0xb0] sm:$0xff]   ;;  %v1618_v34 = vld [vmem:[%s2138_s1 + $0xb8] sm:$0xff]   ;;  %v1619_v38 = vld [vmem:[%s2138_s1 + $0x140] sm:$0xff]  }
   0xd   :  { %1425 = vmatpush3.bf16.msra.mxu1 %v1598_v11  ;;  %v46_v36 = vld [vmem:[%s2139_s0 + $0x38] sm:$0xff]  ;;  %567 = vmatprep.mubr.bf16.mxu0 %v96_v33  ;;  %v49_v40 = vld [vmem:[%s2139_s0 + $0x50] sm:$0xff]  ;;  %v1620_v42 = vld [vmem:[%s2138_s1 + $0x100] sm:$0xff]  }
   0xe   :  { %1426 = vmatprep.subr.bf16.mxu1 %v1601_v14  ;;  %v95_v37 = vpack.c.bf16 %v46_v36, %v39_v35  ;;  %v42_v39 = vld [vmem:[%s2139_s0 + $0x18] sm:$0xff]  ;;  %v41_v43 = vld [vmem:[%s2139_s0 + $0x10] sm:$0xff]  ;;  %v48_v44 = vld [vmem:[%s2139_s0 + $0x48] sm:$0xff] }
   0xf   :  { %1387 = vmatpush3.bf16.msra.mxu0 %v1600_v13  ;;  %v98_v41 = vpack.c.bf16 %v49_v40, %v42_v39  ;;  %v97_v45 = vpack.c.bf16 %v48_v44, %v41_v43  ;;  %v1621_v46 = vld [vmem:[%s2138_s1 + $0x148] sm:$0xff]   ;;  %v54_v48 = vld [vmem:[%s2139_s0 + $0x78] sm:$0xff]  ;;  %v61_v49 = vld [vmem:[%s2139_s0 + $0xb0] sm:$0xff] }
  0x10   :  { %1388 = vmatprep.subr.bf16.mxu0 %v1603_v16  ;;  %v1622_v47 = vld [vmem:[%s2138_s1 + $0x108] sm:$0xff]   ;;  %v53_v50 = vld [vmem:[%s2139_s0 + $0x70] sm:$0xff]  ;;  %v103_v52 = vpack.c.bf16 %v61_v49, %v54_v48  ;;  %v63_v56 = vld [vmem:[%s2139_s0 + $0xc0] sm:$0xff] }
  0x11   :  { %1427 = vmatpush3.bf16.msra.mxu1 %v1602_v15  ;;  %632 = vmatprep.mubr.bf16.mxu1 %v98_v41  ;;  %v60_v51 = vld [vmem:[%s2139_s0 + $0xa8] sm:$0xff]  ;;  %v1623_v54 = vld [vmem:[%s2138_s1 + $0x150] sm:$0xff]   ;;  %v55_v59 = vld [vmem:[%s2139_s0 + $0x80] sm:$0xff] }
  0x12   :  { %1428 = vmatprep.subr.bf16.mxu1 %v1605_v18  ;;  %v102_v53 = vpack.c.bf16 %v60_v51, %v53_v50  ;;  %v56_v55 = vld [vmem:[%s2139_s0 + $0x88] sm:$0xff]  ;;  %v1624_v58 = vld [vmem:[%s2138_s1 + $0x110] sm:$0xff]   ;;  %v62_v60 = vld [vmem:[%s2139_s0 + $0xb8] sm:$0xff] }
  0x13   :  { %1389 = vmatpush3.bf16.msra.mxu0 %v1604_v17  ;;  %v105_v57 = vpack.c.bf16 %v63_v56, %v56_v55  ;;  %v104_v61 = vpack.c.bf16 %v62_v60, %v55_v59  ;;  %v1625_v62 = vld [vmem:[%s2138_s1 + $0x158] sm:$0xff]   ;;  %v68_v0 = vld [vmem:[%s2139_s0 + $0xe8] sm:$0xff]  ;;  %v75_v1 = vld [vmem:[%s2139_s0 + $0x120] sm:$0xff] }
  0x14   :  { %1390 = vmatprep.subr.bf16.mxu0 %v1607_v20  ;;  %v1626_v63 = vld [vmem:[%s2138_s1 + $0x118] sm:$0xff]   ;;  %v110_v2 = vpack.c.bf16 %v75_v1, %v68_v0  ;;  %v67_v3 = vld [vmem:[%s2139_s0 + $0xe0] sm:$0xff]  ;;  %v77_v9 = vld [vmem:[%s2139_s0 + $0x130] sm:$0xff] }
  0x15   :  { %1429 = vmatpush3.bf16.msra.mxu1 %v1606_v19  ;;  %v74_v4 = vld [vmem:[%s2139_s0 + $0x118] sm:$0xff]  ;;  %v1627_v5 = vld [vmem:[%s2138_s1 + $0x160] sm:$0xff]   ;;  %v69_v12 = vld [vmem:[%s2139_s0 + $0xf0] sm:$0xff] }
  0x16   :  { %1430 = vmatprep.subr.bf16.mxu1 %v1609_v22  ;;  %v109_v6 = vpack.c.bf16 %v74_v4, %v67_v3  ;;  %v1628_v7 = vld [vmem:[%s2138_s1 + $0x180] sm:$0xff]   ;;  %v70_v8 = vld [vmem:[%s2139_s0 + $0xf8] sm:$0xff]  ;;  %v76_v13 = vld [vmem:[%s2139_s0 + $0x128] sm:$0xff] }
  0x17   :  { %1391 = vmatpush3.bf16.msra.mxu0 %v1608_v21  ;;  %v112_v10 = vpack.c.bf16 %v77_v9, %v70_v8  ;;  %v1629_v11 = vld [vmem:[%s2138_s1 + $0x120] sm:$0xff]   ;;  %v111_v14 = vpack.c.bf16 %v76_v13, %v69_v12  ;;  %v1630_v15 = vld [vmem:[%s2138_s1 + $0x168] sm:$0xff]   ;;  %v82_v17 = vld [vmem:[%s2139_s0 + $0x158] sm:$0xff] }
  0x18   :  { %1392 = vmatprep.subr.bf16.mxu0 %v1611_v24  ;;  %v1631_v16 = vld [vmem:[%s2138_s1 + $0x128] sm:$0xff]   ;;  %v89_v18 = vld [vmem:[%s2139_s0 + $0x190] sm:$0xff]  ;;  %v91_v24 = vld [vmem:[%s2139_s0 + $0x1a0] sm:$0xff] }
  0x19   :  { %1431 = vmatpush3.bf16.msra.mxu1 %v1610_v23  ;;  %v81_v19 = vld [vmem:[%s2139_s0 + $0x150] sm:$0xff]  ;;  %v117_v20 = vpack.c.bf16 %v89_v18, %v82_v17  ;;  %v88_v21 = vld [vmem:[%s2139_s0 + $0x188] sm:$0xff]  ;;  %v1635_v33 = vld [vmem:[%s2138_s1 + $0x138] sm:$0xff]  }
  0x1a   :  { %1432 = vmatprep.subr.bf16.mxu1 %v1613_v26  ;;  %v1632_v22 = vld [vmem:[%s2138_s1 + $0x170] sm:$0xff]   ;;  %v84_v23 = vld [vmem:[%s2139_s0 + $0x168] sm:$0xff]  ;;  %v43_v35 = vld [vmem:[%s2139_s0 + $0x20] sm:$0xff] }
  0x1b   :  { %1393 = vmatpush3.bf16.msra.mxu0 %v1612_v25  ;;  %v116_v25 = vpack.c.bf16 %v88_v21, %v81_v19  ;;  %v119_v26 = vpack.c.bf16 %v91_v24, %v84_v23  ;;  %v44_v32 = vld [vmem:[%s2139_s0 + $0x28] sm:$0xff]  ;;  %v58_v41 = vld [vmem:[%s2139_s0 + $0x98] sm:$0xff]  ;;  %v59_v44 = vld [vmem:[%s2139_s0 + $0xa0] sm:$0xff] }
  0x1c   :  { %1394 = vmatprep.subr.bf16.mxu0 %v1615_v28  ;;  %v83_v28 = vld [vmem:[%s2139_s0 + $0x160] sm:$0xff]  ;;  %v52_v39 = vld [vmem:[%s2139_s0 + $0x68] sm:$0xff]  ;;  %v57_v51 = vld [vmem:[%s2139_s0 + $0x90] sm:$0xff] }
  0x1d   :  { %1433 = vmatpush3.bf16.msra.mxu1 %v1614_v27  ;;  %v1633_v27 = vld [vmem:[%s2138_s1 + $0x130] sm:$0xff]   ;;  %v80_v48 = vld [vmem:[%s2139_s0 + $0x148] sm:$0xff]  ;;  %v87_v56 = vld [vmem:[%s2139_s0 + $0x180] sm:$0xff] }
  0x1e   :  { %1434 = vmatprep.subr.bf16.mxu1 %v1617_v30  ;;  %v1634_v30 = vld [vmem:[%s2138_s1 + $0x178] sm:$0xff]   ;;  %v71_v60 = vld [vmem:[%s2139_s0 + $0x100] sm:$0xff]  ;;  %v92_v3 = vld [vmem:[%s2139_s0 + $0x1a8] sm:$0xff] }
  0x1f   :  { %1395 = vmatpush3.bf16.msra.mxu0 %v1616_v29  ;;  %v90_v29 = vld [vmem:[%s2139_s0 + $0x198] sm:$0xff]  ;;  %v1640_v9 = vld [vmem:[%s2140_s5 + $0x20] sm:$0xff]  }
  0x20   :  { %1460 = vmatprep.subr.bf16.mxu0 %v1619_v38  ;;  %v118_v31 = vpack.c.bf16 %v90_v29, %v83_v28  ;;  %v45_v38 = vld [vmem:[%s2139_s0 + $0x30] sm:$0xff]  ;;  %v1639_v8 = vld [vmem:[%s2140_s5 + $0x18] sm:$0xff]   ;;  %v2056_v12 = vld [vmem:[%s2141_s2] ss:$0 sm:$0xff] }
  0x21   :  { %1435 = vmatpush3.bf16.msra.mxu1 %v1618_v34  ;;  %v51_v34 = vld [vmem:[%s2139_s0 + $0x60] sm:$0xff]  ;;  %v101_v40 = vpack.c.bf16 %v52_v39, %v45_v38  ;;  %v1643_v17 = vld [vmem:[%s2140_s5 + $0x38] sm:$0xff]  }
  0x22   :  { %568 = vmatmul.mubr.bf16.vlgmr.msra.gmra.mrb[0].mxu0 %v95_v37  ;;  %1529 = vmatprep.subr.bf16.mxu1 %v1628_v7  ;;  %v100_v36 = vpack.c.bf16 %v51_v34, %v44_v32  ;;  %v50_v37 = vld [vmem:[%s2139_s0 + $0x58] sm:$0xff] }
  0x23   :  { %1461 = vmatpush3.bf16.msra.mxu0 %v1620_v42  ;;  %575 = vmatprep.mubr.bf16.mxu0 %v103_v52  ;;  %v65_v42 = vld [vmem:[%s2139_s0 + $0xd0] sm:$0xff]  ;;  %v99_v43 = vpack.c.bf16 %v50_v37, %v43_v35  ;;  %v64_v52 = vld [vmem:[%s2139_s0 + $0xc8] sm:$0xff] }
  0x24   :  { %633 = vmatmul.mubr.bf16.vlgmr.msra.gmra.mrb[0].mxu1 %v97_v45  ;;  %1462 = vmatprep.subr.bf16.mxu0 %v1621_v46  ;;  %v66_v45 = vld [vmem:[%s2139_s0 + $0xd8] sm:$0xff]  ;;  %v107_v46 = vpack.c.bf16 %v65_v42, %v58_v41  ;;  %v106_v55 = vpack.c.bf16 %v64_v52, %v57_v51 }
  0x25   :  { %640 = vmatprep.mubr.bf16.mxu1 %v105_v57  ;;  %1530 = vmatpush3.bf16.msra.mxu1 %v1628_v7  ;;  %v108_v49 = vpack.c.bf16 %v66_v45, %v59_v44  ;;  %v94_v57 = vld [vmem:[%s2139_s0 + $0x1b8] sm:$0xff]  ;;  %v1638_v7 = vld [vmem:[%s2140_s5 + $0x10] sm:$0xff]  }
  0x26   :  { %v122_v59 = vpack.c.bf16 %v94_v57, %v87_v56 }
  0x27   :  { %1463 = vmatpush3.bf16.msra.mxu0 %v1622_v47  ;;  %v73_v47 = vld [vmem:[%s2139_s0 + $0x110] sm:$0xff] }
  0x28   :  { %1464 = vmatprep.subr.bf16.mxu0 %v1623_v54  ;;  %v115_v50 = vpack.c.bf16 %v80_v48, %v73_v47  ;;  %v79_v54 = vld [vmem:[%s2139_s0 + $0x140] sm:$0xff] }
  0x2a   :  { %576 = vmatmul.mubr.bf16.gmra.mrb[4].mxu0 %v102_v53  ;;  %v72_v53 = vld [vmem:[%s2139_s0 + $0x108] sm:$0xff] }
  0x2b   :  { %1465 = vmatpush3.bf16.msra.mxu0 %v1624_v58  ;;  %583 = vmatprep.mubr.bf16.mxu0 %v110_v2  ;;  %v114_v58 = vpack.c.bf16 %v79_v54, %v72_v53  ;;  %v85_v2 = vld [vmem:[%s2139_s0 + $0x170] sm:$0xff] }
  0x2c   :  { %1466 = vmatprep.subr.bf16.mxu0 %v1625_v62  ;;  %641 = vmatmul.mubr.bf16.gmra.mrb[4].mxu1 %v104_v61  ;;  %v78_v61 = vld [vmem:[%s2139_s0 + $0x138] sm:$0xff]  ;;  %v120_v4 = vpack.c.bf16 %v92_v3, %v85_v2 }
  0x2d   :  { %648 = vmatprep.mubr.bf16.mxu1 %v112_v10  ;;  %v86_v62 = vld [vmem:[%s2139_s0 + $0x178] sm:$0xff]  ;;  %v113_v0 = vpack.c.bf16 %v78_v61, %v71_v60  ;;  %v1641_v10 = vld [vmem:[%s2140_s5 + $0x28] sm:$0xff]  }
  0x2f   :  { %1467 = vmatpush3.bf16.msra.mxu0 %v1626_v63  ;;  %v93_v63 = vld [vmem:[%s2139_s0 + $0x1b0] sm:$0xff] }
  0x30   :  { %1468 = vmatprep.subr.bf16.mxu0 %v1627_v5  ;;  %v121_v1 = vpack.c.bf16 %v93_v63, %v86_v62  ;;  %v1636_v5 = vld [vmem:[%s2140_s5] sm:$0xff]  }
  0x32   :  { %584 = vmatmul.mubr.bf16.gmra.mrb[8].mxu0 %v109_v6  ;;  %v1637_v6 = vld [vmem:[%s2140_s5 + $0x8] sm:$0xff]  }
  0x33   :  { %1469 = vmatpush3.bf16.msra.mxu0 %v1629_v11  ;;  %591 = vmatprep.mubr.bf16.mxu0 %v117_v20 }
  0x34   :  { %1470 = vmatprep.subr.bf16.mxu0 %v1630_v15  ;;  %649 = vmatmul.mubr.bf16.gmra.mrb[8].mxu1 %v111_v14  ;;  %v1642_v14 = vld [vmem:[%s2140_s5 + $0x30] sm:$0xff]  }
  0x35   :  { %656 = vmatprep.mubr.bf16.mxu1 %v119_v26 }
  0x37   :  { %1471 = vmatpush3.bf16.msra.mxu0 %v1631_v16 }
  0x38   :  { %1472 = vmatprep.subr.bf16.mxu0 %v1632_v22 }
  0x3a   :  { %592 = vmatmul.mubr.bf16.gmra.mrb[12].mxu0 %v116_v25 }
  0x3b   :  { %1473 = vmatpush3.bf16.msra.mxu0 %v1633_v27  ;;  %697 = vmatprep.mubr.bf16.mxu0 %v100_v36 }
  0x3c   :  { %1474 = vmatprep.subr.bf16.mxu0 %v1634_v30  ;;  %657 = vmatmul.mubr.bf16.gmra.mrb[12].mxu1 %v118_v31 }
  0x3d   :  { %1531 = vmatprep.mubr.msk.bf16.mxu1 %vm522_vm0, %v101_v40 }
  0x3f   :  { %1475 = vmatpush3.bf16.msra.mxu0 %v1635_v33 }
  0x40   :  { %1539 = vmatprep.subr.bf16.mxu0 %v1636_v5 }
  0x42   :  { %698 = vmatmul.mubr.bf16.vlgmr.msra.gmra.mrb[16].mxu0 %v99_v43 }
  0x43   :  { %705 = vmatprep.mubr.bf16.mxu0 %v107_v46  ;;  %1540 = vmatpush3.bf16.msra.mxu0 %v1636_v5 }
  0x44   :  { %1532 = vmatmul.mubr.msk.bf16.vlgmr.msra.gmra.mrb[16].mxu1 %vm522_vm0, %v108_v49  ;;  %1541 = vmatprep.subr.bf16.mxu0 %v1637_v6 }
  0x45   :  { %1535 = vmatprep.mubr.msk.bf16.mxu1 %vm522_vm0, %v115_v50 }
  0x47   :  { %1542 = vmatpush3.bf16.msra.mxu0 %v1637_v6 }
  0x48   :  { %1543 = vmatprep.subr.bf16.mxu0 %v1638_v7 }
  0x4a   :  { %706 = vmatmul.mubr.bf16.gmra.mrb[20].mxu0 %v106_v55 }
  0x4b   :  { %713 = vmatprep.mubr.bf16.mxu0 %v114_v58  ;;  %1544 = vmatpush3.bf16.msra.mxu0 %v1638_v7 }
  0x4c   :  { %1536 = vmatmul.mubr.msk.bf16.gmra.mrb[20].mxu1 %vm522_vm0, %v122_v59  ;;  %1545 = vmatprep.subr.bf16.mxu0 %v1639_v8 }
  0x4f   :  { %1546 = vmatpush3.bf16.msra.mxu0 %v1639_v8 }
  0x50   :  { %1547 = vmatprep.subr.bf16.mxu0 %v1640_v9 }
  0x52   :  { %714 = vmatmul.mubr.bf16.gmra.mrb[24].mxu0 %v113_v0 }
  0x53   :  { %721 = vmatprep.mubr.bf16.mxu0 %v121_v1  ;;  %1548 = vmatpush3.bf16.msra.mxu0 %v1640_v9 }
  0x54   :  { %1549 = vmatprep.subr.bf16.mxu0 %v1641_v10 }
  0x57   :  { %1550 = vmatpush3.bf16.msra.mxu0 %v1641_v10 }
  0x58   :  { %1551 = vmatprep.subr.bf16.mxu0 %v1642_v14 }
  0x5a   :  { %722 = vmatmul.mubr.bf16.gmra.mrb[28].mxu0 %v120_v4 }
  0x5b   :  { %1552 = vmatpush3.bf16.msra.mxu0 %v1642_v14 }
  0x5c   :  { %1553 = vmatprep.subr.bf16.mxu0 %v1643_v17 }
  0x5f   :  { %1554 = vmatpush3.bf16.msra.mxu0 %v1643_v17 }
  0xf5   :  { %v1396_v11 = vpop.f32.mrb[0].mxu0 }
  0xf6   :  { %v1397_v13 = vpop.f32.mrb[1].mxu0 }
  0xf7   :  { %v1398_v15 = vadd.f32 %v1397_v13, %v1396_v11  ;;  %v1399_v16 = vpop.f32.mrb[2].mxu0  ;;  %v1436_v18 = vpop.f32.mrb[0].mxu1 }
  0xf8   :  { %v1400_v19 = vpop.f32.mrb[3].mxu0  ;;  %v1437_v22 = vpop.f32.mrb[1].mxu1 }
  0xf9   :  { %v570_v20 = vadd.f32 %v1398_v15, %v2056_v12  ;;  %v1401_v21 = vadd.f32 %v1400_v19, %v1399_v16  ;;  %v1438_v23 = vadd.f32 %v1437_v22, %v1436_v18  ;;  %v1439_v24 = vpop.f32.mrb[2].mxu1 }
  0xfa   :  { %v1440_v26 = vpop.f32.mrb[3].mxu1 }
  0xfb   :  { %v573_v25 = vadd.f32 %v1401_v21, %v2056_v12  ;;  %v635_v27 = vadd.f32 %v1438_v23, %v570_v20  ;;  %v1441_v28 = vadd.f32 %v1440_v26, %v1439_v24 }
  0xfd   :  { %v1402_v29 = vpop.f32.mrb[4].mxu0  ;;  %v638_v30 = vadd.f32 %v1441_v28, %v573_v25 }
  0xfe   :  { %v1403_v31 = vpop.f32.mrb[5].mxu0 }
  0xff   :  { %v1404_v32 = vadd.f32 %v1403_v31, %v1402_v29  ;;  %v1405_v33 = vpop.f32.mrb[6].mxu0  ;;  %v1442_v34 = vpop.f32.mrb[4].mxu1 }
 0x100   :  { %v1406_v35 = vpop.f32.mrb[7].mxu0  ;;  %v1443_v38 = vpop.f32.mrb[5].mxu1 }
 0x101   :  { %v578_v36 = vadd.f32 %v1404_v32, %v2056_v12  ;;  %v1407_v37 = vadd.f32 %v1406_v35, %v1405_v33  ;;  %v1444_v39 = vadd.f32 %v1443_v38, %v1442_v34  ;;  %v1445_v40 = vpop.f32.mrb[6].mxu1 }
 0x102   :  { %v1446_v42 = vpop.f32.mrb[7].mxu1 }
 0x103   :  { %v581_v41 = vadd.f32 %v1407_v37, %v2056_v12  ;;  %v643_v43 = vadd.f32 %v1444_v39, %v578_v36  ;;  %v1447_v44 = vadd.f32 %v1446_v42, %v1445_v40 }
 0x105   :  { %v1408_v45 = vpop.f32.mrb[8].mxu0  ;;  %v646_v46 = vadd.f32 %v1447_v44, %v581_v41 }
 0x106   :  { %v1409_v47 = vpop.f32.mrb[9].mxu0 }
 0x107   :  { %v1410_v48 = vadd.f32 %v1409_v47, %v1408_v45  ;;  %v1411_v49 = vpop.f32.mrb[10].mxu0  ;;  %v1448_v50 = vpop.f32.mrb[8].mxu1 }
 0x108   :  { %v1412_v51 = vpop.f32.mrb[11].mxu0  ;;  %v1449_v54 = vpop.f32.mrb[9].mxu1 }
 0x109   :  { %v586_v52 = vadd.f32 %v1410_v48, %v2056_v12  ;;  %v1413_v53 = vadd.f32 %v1412_v51, %v1411_v49  ;;  %v1450_v55 = vadd.f32 %v1449_v54, %v1448_v50  ;;  %v1451_v56 = vpop.f32.mrb[10].mxu1 }
 0x10a   :  { %v1452_v58 = vpop.f32.mrb[11].mxu1 }
 0x10b   :  { %v589_v57 = vadd.f32 %v1413_v53, %v2056_v12  ;;  %v651_v59 = vadd.f32 %v1450_v55, %v586_v52  ;;  %v1453_v60 = vadd.f32 %v1452_v58, %v1451_v56 }
 0x10d   :  { %v1414_v61 = vpop.f32.mrb[12].mxu0  ;;  %v654_v62 = vadd.f32 %v1453_v60, %v589_v57 }
 0x10e   :  { %v1415_v63 = vpop.f32.mrb[13].mxu0 }
 0x10f   :  { %v1416_v0 = vadd.f32 %v1415_v63, %v1414_v61  ;;  %v1417_v1 = vpop.f32.mrb[14].mxu0  ;;  %v1454_v2 = vpop.f32.mrb[12].mxu1 }
 0x110   :  { %v1418_v3 = vpop.f32.mrb[15].mxu0  ;;  %v1455_v6 = vpop.f32.mrb[13].mxu1 }
 0x111   :  { %v594_v4 = vadd.f32 %v1416_v0, %v2056_v12  ;;  %v1419_v5 = vadd.f32 %v1418_v3, %v1417_v1  ;;  %v1456_v7 = vadd.f32 %v1455_v6, %v1454_v2  ;;  %v1457_v8 = vpop.f32.mrb[14].mxu1 }
 0x112   :  { %v1458_v10 = vpop.f32.mrb[15].mxu1 }
 0x113   :  { %v597_v9 = vadd.f32 %v1419_v5, %v2056_v12  ;;  %v659_v11 = vadd.f32 %v1456_v7, %v594_v4  ;;  %v1459_v13 = vadd.f32 %v1458_v10, %v1457_v8 }
 0x115   :  { %v1476_v14 = vpop.f32.mrb[16].mxu0  ;;  %v662_v15 = vadd.f32 %v1459_v13, %v597_v9 }
 0x116   :  { %v1477_v16 = vpop.f32.mrb[17].mxu0 }
 0x117   :  { %v1478_v17 = vadd.f32 %v1477_v16, %v1476_v14  ;;  %v1479_v18 = vpop.f32.mrb[18].mxu0  ;;  %v1533_v20 = vpop.f32.mrb[16].mxu1 }
 0x118   :  { %v1480_v19 = vpop.f32.mrb[19].mxu0  ;;  %v764_v23 = vpop.f32.mrb[17].mxu1 }
 0x119   :  { %v1481_v21 = vadd.f32 %v1480_v19, %v1479_v18  ;;  %v700_v22 = vadd.f32 %v1478_v17, %v635_v27  ;;  %v1534_v24 = vpop.f32.mrb[18].mxu1 }
 0x11a   :  { %v767_v28 = vpop.f32.mrb[19].mxu1 }
 0x11b   :  { %v765_v25 = vadd.f32 %v764_v23, %v700_v22  ;;  %v703_v26 = vadd.f32 %v1481_v21, %v638_v30 }
 0x11d   :  { %v768_v29 = vadd.f32 %v767_v28, %v703_v26  ;;  %v1482_v31 = vpop.f32.mrb[20].mxu0 }
 0x11e   :  { %v1483_v12 = vpop.f32.mrb[21].mxu0 }
 0x11f   :  { %v797_v32 = vadd.f32 %v768_v29, %v765_v25  ;;  %v1484_v33 = vadd.f32 %v1483_v12, %v1482_v31  ;;  %v1485_v34 = vpop.f32.mrb[22].mxu0  ;;  %v1537_v36 = vpop.f32.mrb[20].mxu1 }
 0x120   :  { %v1486_v35 = vpop.f32.mrb[23].mxu0  ;;  %v780_v39 = vpop.f32.mrb[21].mxu1 }
 0x121   :  { %v708_v37 = vadd.f32 %v1484_v33, %v643_v43  ;;  %v1487_v38 = vadd.f32 %v1486_v35, %v1485_v34  ;;  %v1538_v40 = vpop.f32.mrb[22].mxu1 }
 0x122   :  { %v783_v27 = vpop.f32.mrb[23].mxu1 }
 0x123   :  { %v773_v41 = vadd.f32 %v1533_v20, %v708_v37  ;;  %v711_v42 = vadd.f32 %v1487_v38, %v646_v46 }
 0x125   :  { %v776_v44 = vadd.f32 %v1534_v24, %v711_v42  ;;  %v1488_v45 = vpop.f32.mrb[24].mxu0  ;;  %v798_v47 = vadd.f32 %v797_v32, %v773_v41 }
 0x126   :  { %v1489_v30 = vpop.f32.mrb[25].mxu0 }
 0x127   :  { %v1490_v48 = vadd.f32 %v1489_v30, %v1488_v45  ;;  %v1491_v49 = vpop.f32.mrb[26].mxu0  ;;  %v799_v50 = vadd.f32 %v798_v47, %v776_v44  ;;  %v1358_v47 = vld [vmem:[%s2142_s3] ss:$0 sm:$0xff] }
 0x128   :  { %v1492_v51 = vpop.f32.mrb[27].mxu0 }
 0x129   :  { %v1493_v52 = vadd.f32 %v1492_v51, %v1491_v49  ;;  %v716_v53 = vadd.f32 %v1490_v48, %v651_v59  ;;  %v1359_v51 = vld [vmem:[%s2143_s4] ss:$0 sm:$0xff] }
 0x12b   :  { %v781_v54 = vadd.f32 %v780_v39, %v716_v53  ;;  %v719_v55 = vadd.f32 %v1493_v52, %v654_v62 }
 0x12d   :  { %v800_v56 = vadd.f32 %v799_v50, %v781_v54  ;;  %v784_v43 = vadd.f32 %v783_v27, %v719_v55  ;;  %v1494_v57 = vpop.f32.mrb[28].mxu0 }
 0x12e   :  { %v1495_v58 = vpop.f32.mrb[29].mxu0 }
 0x12f   :  { %v801_v60 = vadd.f32 %v800_v56, %v784_v43  ;;  %v1496_v61 = vadd.f32 %v1495_v58, %v1494_v57  ;;  %v1497_v46 = vpop.f32.mrb[30].mxu0 }
 0x130   :  { %v1498_v63 = vpop.f32.mrb[31].mxu0 }
 0x131   :  { %v724_v0 = vadd.f32 %v1496_v61, %v659_v11  ;;  %v1499_v1 = vadd.f32 %v1498_v63, %v1497_v46 }
 0x133   :  { %v789_v2 = vadd.f32 %v1537_v36, %v724_v0  ;;  %v727_v3 = vadd.f32 %v1499_v1, %v662_v15 }
 0x135   :  { %v802_v4 = vadd.f32 %v801_v60, %v789_v2  ;;  %v792_v5 = vadd.f32 %v1538_v40, %v727_v3 }
 0x137   :  { %v803_v6 = vadd.f32 %v802_v4, %v792_v5 }
 0x139   :  { %v804_v7 = vrot.slane %v803_v6, 4 }
 0x13b   :  { %v805_v8 = vadd.f32 %v804_v7, %v803_v6 }
 0x13d   :  { %v806_v59 = vrot.slane %v805_v8, 2 }
 0x13f   :  { %v807_v9 = vadd.f32 %v806_v59, %v805_v8 }
 0x141   :  { %v808_v62 = vrot.slane %v807_v9, 1 }
 0x143   :  { %v809_v10 = vadd.f32 %v808_v62, %v807_v9 }
 0x145   :  { %v811_v13 = vmul.f32 0.015625, %v809_v10 }
 0x147   :  { %v812_v14 = vsub.f32 %v765_v25, %v811_v13  ;;  %v813_v16 = vsub.f32 %v768_v29, %v811_v13  ;;  %v814_v17 = vsub.f32 %v773_v41, %v811_v13  ;;  %v815_v18 = vsub.f32 %v776_v44, %v811_v13 }
 0x148   :  { %v816_v19 = vsub.f32 %v781_v54, %v811_v13  ;;  %v817_v20 = vsub.f32 %v784_v43, %v811_v13  ;;  %v818_v11 = vsub.f32 %v789_v2, %v811_v13  ;;  %v819_v21 = vsub.f32 %v792_v5, %v811_v13 }
 0x149   :  { %v820_v22 = vmul.f32 %v812_v14, %v812_v14  ;;  %v821_v15 = vmul.f32 %v813_v16, %v813_v16  ;;  %v822_v23 = vmul.f32 %v814_v17, %v814_v17  ;;  %v823_v26 = vmul.f32 %v815_v18, %v815_v18 }
 0x14a   :  { %v824_v31 = vmul.f32 %v816_v19, %v816_v19  ;;  %v825_v32 = vmul.f32 %v817_v20, %v817_v20  ;;  %v826_v34 = vmul.f32 %v818_v11, %v818_v11  ;;  %v827_v25 = vmul.f32 %v819_v21, %v819_v21 }
 0x14b   :  { %v828_v24 = vadd.f32 %v821_v15, %v820_v22 }
 0x14d   :  { %v829_v28 = vadd.f32 %v828_v24, %v822_v23 }
 0x14f   :  { %v830_v12 = vadd.f32 %v829_v28, %v823_v26 }
 0x151   :  { %v831_v33 = vadd.f32 %v830_v12, %v824_v31  ;;  %v1644_v31 = vld [vmem:[%s2144_s9] sm:$0xff]   ;;  %v1645_v12 = vld [vmem:[%s2144_s9 + $0x8] sm:$0xff]  }
 0x152   :  { %1563 = vmatprep.subr.bf16.mxu1 %v1644_v31 }
 0x153   :  { %v832_v35 = vadd.f32 %v831_v33, %v825_v32  ;;  %1564 = vmatpush3.bf16.msra.mxu1 %v1644_v31  ;;  %v1646_v32 = vld [vmem:[%s2144_s9 + $0x10] sm:$0xff]   ;;  %v1647_v33 = vld [vmem:[%s2144_s9 + $0x18] sm:$0xff]  }
 0x154   :  { %1565 = vmatprep.subr.bf16.mxu1 %v1645_v12 }
 0x155   :  { %v833_v29 = vadd.f32 %v832_v35, %v826_v34  ;;  %v1648_v34 = vld [vmem:[%s2144_s9 + $0x20] sm:$0xff]   ;;  %v1649_v35 = vld [vmem:[%s2144_s9 + $0x28] sm:$0xff]  }
 0x157   :  { %v834_v36 = vadd.f32 %v833_v29, %v827_v25  ;;  %1566 = vmatpush3.bf16.msra.mxu1 %v1645_v12  ;;  %v1650_v25 = vld [vmem:[%s2144_s9 + $0x30] sm:$0xff]   ;;  %v1651_v29 = vld [vmem:[%s2144_s9 + $0x38] sm:$0xff]  }
 0x158   :  { %1567 = vmatprep.subr.bf16.mxu1 %v1646_v32 }
 0x159   :  { %v835_v37 = vrot.slane %v834_v36, 4 }
 0x15b   :  { %v836_v38 = vadd.f32 %v835_v37, %v834_v36  ;;  %1568 = vmatpush3.bf16.msra.mxu1 %v1646_v32  ;;  %v1360_v37 = vld [vmem:[%s2145_s6] ss:$0 sm:$0xff] }
 0x15c   :  { %1569 = vmatprep.subr.bf16.mxu1 %v1647_v33 }
 0x15d   :  { %v837_v39 = vrot.slane %v836_v38, 2 }
 0x15f   :  { %v838_v40 = vadd.f32 %v837_v39, %v836_v38  ;;  %1570 = vmatpush3.bf16.msra.mxu1 %v1647_v33 }
 0x160   :  { %1571 = vmatprep.subr.bf16.mxu1 %v1648_v34 }
 0x161   :  { %v839_v41 = vrot.slane %v838_v40, 1 }
 0x163   :  { %v840_v42 = vadd.f32 %v839_v41, %v838_v40  ;;  %1572 = vmatpush3.bf16.msra.mxu1 %v1648_v34 }
 0x164   :  { %1573 = vmatprep.subr.bf16.mxu1 %v1649_v35 }
 0x165   :  { %v841_v27 = vmul.f32 0.015625, %v840_v42 }
 0x167   :  { %v842_v44 = vadd.f32 1e-05, %v841_v27  ;;  %1574 = vmatpush3.bf16.msra.mxu1 %v1649_v35 }
 0x168   :  { %1575 = vmatprep.subr.bf16.mxu1 %v1650_v25 }
 0x169   :  { %1652 = vrsqrt.f32 %v842_v44 }
 0x16b   :  { %1576 = vmatpush3.bf16.msra.mxu1 %v1650_v25 }
 0x16c   :  { %1577 = vmatprep.subr.bf16.mxu1 %v1651_v29 }
 0x16f   :  { %1578 = vmatpush3.bf16.msra.mxu1 %v1651_v29  ;;  %v1369_v29 = vld [vmem:[%s2146_s7] ss:$0 sm:$0xff] }
 0x173   :  { %v1653_v45 = vpop.eup %1652 }
 0x174   :  { %v851_v30 = vmul.f32 %v1653_v45, %v819_v21  ;;  %v844_v48 = vmul.f32 %v1653_v45, %v812_v14  ;;  %v845_v49 = vmul.f32 %v1653_v45, %v813_v16  ;;  %v846_v50 = vmul.f32 %v1653_v45, %v814_v17 }
 0x175   :  { %v847_v52 = vmul.f32 %v1653_v45, %v815_v18  ;;  %v848_v53 = vmul.f32 %v1653_v45, %v816_v19  ;;  %v849_v54 = vmul.f32 %v1653_v45, %v817_v20  ;;  %v850_v55 = vmul.f32 %v1653_v45, %v818_v11 }
 0x176   :  { %v865_v56 = vmul.f32 %v1358_v47, %v851_v30  ;;  %v858_v43 = vmul.f32 %v1358_v47, %v844_v48  ;;  %v859_v57 = vmul.f32 %v1358_v47, %v845_v49  ;;  %v860_v58 = vmul.f32 %v1358_v47, %v846_v50 }
 0x177   :  { %v861_v60 = vmul.f32 %v1358_v47, %v847_v52  ;;  %v862_v61 = vmul.f32 %v1358_v47, %v848_v53  ;;  %v863_v46 = vmul.f32 %v1358_v47, %v849_v54  ;;  %v864_v63 = vmul.f32 %v1358_v47, %v850_v55 }
 0x178   :  { %v872_v0 = vadd.f32 %v1359_v51, %v858_v43  ;;  %v873_v1 = vadd.f32 %v1359_v51, %v859_v57  ;;  %v874_v2 = vadd.f32 %v1359_v51, %v860_v58  ;;  %v879_v3 = vadd.f32 %v1359_v51, %v865_v56 }
 0x179   :  { %v875_v4 = vadd.f32 %v1359_v51, %v861_v60  ;;  %v876_v5 = vadd.f32 %v1359_v51, %v862_v61  ;;  %v877_v6 = vadd.f32 %v1359_v51, %v863_v46  ;;  %v878_v7 = vadd.f32 %v1359_v51, %v864_v63 }
 0x17a   :  { %vm880_vm1 = vcmp.ge.f32.partialorder %v872_v0, 0.0  ;;  %vm881_vm2 = vcmp.ge.f32.partialorder %v873_v1, 0.0  ;;  %v888_v8 = vmul.f32 0.01, %v872_v0  ;;  %v889_v59 = vmul.f32 0.01, %v873_v1 }
 0x17b   :  { %vm882_vm3 = vcmp.ge.f32.partialorder %v874_v2, 0.0  ;;  %vm883_vm4 = vcmp.ge.f32.partialorder %v875_v4, 0.0  ;;  %v890_v9 = vmul.f32 0.01, %v874_v2  ;;  %v891_v62 = vmul.f32 0.01, %v875_v4 }
 0x17c   :  { %v896_v10 = vsel %vm880_vm1, %v872_v0, %v888_v8  ;;  %v897_v13 = vsel %vm881_vm2, %v873_v1, %v889_v59  ;;  %vm884_vm5 = vcmp.ge.f32.partialorder %v876_v5, 0.0  ;;  %vm885_vm6 = vcmp.ge.f32.partialorder %v877_v6, 0.0 }
 0x17d   :  { %v904_v14 = vpack.c.bf16 %v897_v13, %v896_v10  ;;  %v898_v16 = vsel %vm882_vm3, %v874_v2, %v890_v9  ;;  %v899_v17 = vsel %vm883_vm4, %v875_v4, %v891_v62  ;;  %v892_v18 = vmul.f32 0.01, %v876_v5 }
 0x17e   :  { %v905_v19 = vpack.c.bf16 %v899_v17, %v898_v16  ;;  %v893_v20 = vmul.f32 0.01, %v877_v6  ;;  %vm886_vm7 = vcmp.ge.f32.partialorder %v878_v7, 0.0  ;;  %vm887_vm8 = vcmp.ge.f32.partialorder %v879_v3, 0.0 }
 0x17f   :  { %1555 = vmatprep.mubr.bf16.mxu0 %v904_v14  ;;  %v900_v11 = vsel %vm884_vm5, %v876_v5, %v892_v18  ;;  %v894_v21 = vmul.f32 0.01, %v878_v7  ;;  %v895_v22 = vmul.f32 0.01, %v879_v3 }
 0x180   :  { %1556 = vmatmul.mubr.bf16.vlgmr.msra.gmra.mrb[32].mxu0 %v905_v19  ;;  %v901_v15 = vsel %vm885_vm6, %v877_v6, %v893_v20 }
 0x181   :  { %v906_v23 = vpack.c.bf16 %v901_v15, %v900_v11  ;;  %v902_v24 = vsel %vm886_vm7, %v878_v7, %v894_v21  ;;  %v903_v26 = vsel %vm887_vm8, %v879_v3, %v895_v22 }
 0x182   :  { %v907_v28 = vpack.c.bf16 %v903_v26, %v902_v24 }
 0x183   :  { %1559 = vmatprep.mubr.bf16.mxu0 %v906_v23 }
 0x188   :  { %1560 = vmatmul.mubr.bf16.gmra.mrb[36].mxu0 %v907_v28 }
 0x253   :  { %v1557_v36 = vpop.f32.mrb[32].mxu0 }
 0x254   :  { %v1013_v38 = vpop.f32.mrb[33].mxu0  ;;  %v1022_v27 = vadd.f32 %v1557_v36, %v1360_v37 }
 0x255   :  { %v1558_v39 = vpop.f32.mrb[34].mxu0  ;;  %v1014_v41 = vadd.f32 %v1360_v37, %v1013_v38 }
 0x256   :  { %v1016_v40 = vpop.f32.mrb[35].mxu0  ;;  %v1025_v45 = vadd.f32 %v1558_v39, %v1360_v37 }
 0x257   :  { %v1017_v42 = vadd.f32 %v1360_v37, %v1016_v40  ;;  %v1370_v40 = vld [vmem:[%s2147_s8] ss:$0 sm:$0xff] }
 0x259   :  { %v1046_v44 = vadd.f32 %v1017_v42, %v1014_v41 }
 0x25b   :  { %v1047_v47 = vadd.f32 %v1046_v44, %v1022_v27  ;;  %v1561_v30 = vpop.f32.mrb[36].mxu0 }
 0x25c   :  { %v1029_v48 = vpop.f32.mrb[37].mxu0  ;;  %v1038_v55 = vadd.f32 %v1561_v30, %v1360_v37 }
 0x25d   :  { %v1030_v49 = vadd.f32 %v1360_v37, %v1029_v48  ;;  %v1048_v50 = vadd.f32 %v1047_v47, %v1025_v45  ;;  %v1562_v51 = vpop.f32.mrb[38].mxu0 }
 0x25e   :  { %v1032_v52 = vpop.f32.mrb[39].mxu0  ;;  %v1041_v43 = vadd.f32 %v1562_v51, %v1360_v37 }
 0x25f   :  { %v1049_v53 = vadd.f32 %v1048_v50, %v1030_v49  ;;  %v1033_v54 = vadd.f32 %v1360_v37, %v1032_v52 }
 0x261   :  { %v1050_v56 = vadd.f32 %v1049_v53, %v1033_v54 }
 0x263   :  { %v1051_v57 = vadd.f32 %v1050_v56, %v1038_v55 }
 0x265   :  { %v1052_v58 = vadd.f32 %v1051_v57, %v1041_v43 }
 0x267   :  { %v1053_v60 = vrot.slane %v1052_v58, 4 }
 0x269   :  { %v1054_v61 = vadd.f32 %v1053_v60, %v1052_v58 }
 0x26b   :  { %v1055_v46 = vrot.slane %v1054_v61, 2 }
 0x26d   :  { %v1056_v63 = vadd.f32 %v1055_v46, %v1054_v61 }
 0x26f   :  { %v1057_v0 = vrot.slane %v1056_v63, 1 }
 0x271   :  { %v1058_v1 = vadd.f32 %v1057_v0, %v1056_v63 }
 0x273   :  { %v1059_v2 = vmul.f32 0.015625, %v1058_v1 }
 0x275   :  { %v1060_v3 = vsub.f32 %v1014_v41, %v1059_v2  ;;  %v1061_v4 = vsub.f32 %v1017_v42, %v1059_v2  ;;  %v1062_v5 = vsub.f32 %v1022_v27, %v1059_v2  ;;  %v1063_v6 = vsub.f32 %v1025_v45, %v1059_v2 }
 0x276   :  { %v1064_v7 = vsub.f32 %v1030_v49, %v1059_v2  ;;  %v1065_v8 = vsub.f32 %v1033_v54, %v1059_v2  ;;  %v1066_v59 = vsub.f32 %v1038_v55, %v1059_v2  ;;  %v1067_v9 = vsub.f32 %v1041_v43, %v1059_v2 }
 0x277   :  { %v1068_v62 = vmul.f32 %v1060_v3, %v1060_v3  ;;  %v1069_v10 = vmul.f32 %v1061_v4, %v1061_v4  ;;  %v1070_v13 = vmul.f32 %v1062_v5, %v1062_v5  ;;  %v1071_v16 = vmul.f32 %v1063_v6, %v1063_v6 }
 0x278   :  { %v1072_v18 = vmul.f32 %v1064_v7, %v1064_v7  ;;  %v1073_v20 = vmul.f32 %v1065_v8, %v1065_v8  ;;  %v1074_v21 = vmul.f32 %v1066_v59, %v1066_v59  ;;  %v1075_v15 = vmul.f32 %v1067_v9, %v1067_v9 }
 0x279   :  { %v1076_v14 = vadd.f32 %v1069_v10, %v1068_v62 }
 0x27b   :  { %v1077_v17 = vadd.f32 %v1076_v14, %v1070_v13 }
 0x27d   :  { %v1078_v19 = vadd.f32 %v1077_v17, %v1071_v16 }
 0x27f   :  { %v1079_v11 = vadd.f32 %v1078_v19, %v1072_v18  ;;  %v1371_v18 = vld [vmem:[%s2148_s10] ss:$0 sm:$0xff] }
 0x281   :  { %v1080_v22 = vadd.f32 %v1079_v11, %v1073_v20 }
 0x283   :  { %v1081_v23 = vadd.f32 %v1080_v22, %v1074_v21 }
 0x285   :  { %v1082_v24 = vadd.f32 %v1081_v23, %v1075_v15 }
 0x287   :  { %v1083_v26 = vrot.slane %v1082_v24, 4 }
 0x289   :  { %v1084_v28 = vadd.f32 %v1083_v26, %v1082_v24 }
 0x28b   :  { %v1085_v31 = vrot.slane %v1084_v28, 2 }
 0x28d   :  { %v1086_v12 = vadd.f32 %v1085_v31, %v1084_v28 }
 0x28f   :  { %v1087_v32 = vrot.slane %v1086_v12, 1 }
 0x291   :  { %v1088_v33 = vadd.f32 %v1087_v32, %v1086_v12 }
 0x293   :  { %v1089_v34 = vmul.f32 0.015625, %v1088_v33 }
 0x295   :  { %v1090_v35 = vadd.f32 1e-05, %v1089_v34 }
 0x297   :  { %1654 = vrsqrt.f32 %v1090_v35 }
 0x2a1   :  { %v1655_v25 = vpop.eup %1654 }
 0x2a2   :  { %v1094_v36 = vmul.f32 %v1655_v25, %v1062_v5  ;;  %v1095_v37 = vmul.f32 %v1655_v25, %v1063_v6  ;;  %v1097_v38 = vmul.f32 %v1655_v25, %v1065_v8  ;;  %v1092_v39 = vmul.f32 %v1655_v25, %v1060_v3 }
 0x2a3   :  { %v1093_v41 = vmul.f32 %v1655_v25, %v1061_v4  ;;  %v1096_v42 = vmul.f32 %v1655_v25, %v1064_v7  ;;  %v1098_v27 = vmul.f32 %v1655_v25, %v1066_v59  ;;  %v1099_v44 = vmul.f32 %v1655_v25, %v1067_v9 }
 0x2a4   :  { %v1109_v45 = vmul.f32 %v1369_v29, %v1095_v37  ;;  %v1111_v47 = vmul.f32 %v1369_v29, %v1097_v38  ;;  %v1106_v30 = vmul.f32 %v1369_v29, %v1092_v39  ;;  %v1108_v48 = vmul.f32 %v1369_v29, %v1094_v36 }
 0x2a5   :  { %v1107_v49 = vmul.f32 %v1369_v29, %v1093_v41  ;;  %v1110_v50 = vmul.f32 %v1369_v29, %v1096_v42  ;;  %v1112_v51 = vmul.f32 %v1369_v29, %v1098_v27  ;;  %v1113_v52 = vmul.f32 %v1369_v29, %v1099_v44 }
 0x2a6   :  { %v1125_v53 = vadd.f32 %v1370_v40, %v1111_v47  ;;  %v1120_v54 = vadd.f32 %v1370_v40, %v1106_v30  ;;  %v1122_v55 = vadd.f32 %v1370_v40, %v1108_v48  ;;  %v1123_v56 = vadd.f32 %v1370_v40, %v1109_v45 }
 0x2a7   :  { %v1121_v43 = vadd.f32 %v1370_v40, %v1107_v49  ;;  %v1124_v57 = vadd.f32 %v1370_v40, %v1110_v50  ;;  %v1126_v58 = vadd.f32 %v1370_v40, %v1112_v51  ;;  %v1127_v60 = vadd.f32 %v1370_v40, %v1113_v52 }
 0x2a8   :  { %vm1128_vm9 = vcmp.ge.f32.partialorder %v1120_v54, 0.0  ;;  %v1136_v61 = vmul.f32 0.01, %v1120_v54  ;;  %vm1130_vm10 = vcmp.ge.f32.partialorder %v1122_v55, 0.0  ;;  %vm1131_vm11 = vcmp.ge.f32.partialorder %v1123_v56, 0.0 }
 0x2a9   :  { %vm1129_vm12 = vcmp.ge.f32.partialorder %v1121_v43, 0.0  ;;  %v1137_v46 = vmul.f32 0.01, %v1121_v43  ;;  %v1138_v63 = vmul.f32 0.01, %v1122_v55  ;;  %vm1132_vm13 = vcmp.ge.f32.partialorder %v1124_v57, 0.0 }
 0x2aa   :  { %v1144_v0 = vsel %vm1128_vm9, %v1120_v54, %v1136_v61  ;;  %v1139_v1 = vmul.f32 0.01, %v1123_v56  ;;  %vm1133_vm14 = vcmp.ge.f32.partialorder %v1125_v53, 0.0  ;;  %v1140_v2 = vmul.f32 0.01, %v1124_v57 }
 0x2ab   :  { %v1145_v3 = vsel %vm1129_vm12, %v1121_v43, %v1137_v46  ;;  %v1146_v4 = vsel %vm1130_vm10, %v1122_v55, %v1138_v63  ;;  %v1141_v5 = vmul.f32 0.01, %v1125_v53  ;;  %vm1134_vm15 = vcmp.ge.f32.partialorder %v1126_v58, 0.0 }
 0x2ac   :  { %v1152_v6 = vpack.c.bf16 %v1145_v3, %v1144_v0  ;;  %v1147_v7 = vsel %vm1131_vm11, %v1123_v56, %v1139_v1  ;;  %v1148_v8 = vsel %vm1132_vm13, %v1124_v57, %v1140_v2  ;;  %vm1135_vm0 = vcmp.ge.f32.partialorder %v1127_v60, 0.0 }
 0x2ad   :  { %v1153_v59 = vpack.c.bf16 %v1147_v7, %v1146_v4  ;;  %v1149_v9 = vsel %vm1133_vm14, %v1125_v53, %v1141_v5  ;;  %v1142_v62 = vmul.f32 0.01, %v1126_v58  ;;  %v1143_v10 = vmul.f32 0.01, %v1127_v60 }
 0x2ae   :  { %1579 = vmatprep.mubr.bf16.mxu1 %v1152_v6  ;;  %v1154_v13 = vpack.c.bf16 %v1149_v9, %v1148_v8 }
 0x2af   :  { %1580 = vmatmul.mubr.bf16.vlgmr.msra.gmra.mrb[24].mxu1 %v1153_v59  ;;  %v1150_v14 = vsel %vm1134_vm15, %v1126_v58, %v1142_v62  ;;  %v1151_v16 = vsel %vm1135_vm0, %v1127_v60, %v1143_v10 }
 0x2b0   :  { %1583 = vmatprep.mubr.bf16.mxu1 %v1154_v13  ;;  %v1155_v17 = vpack.c.bf16 %v1151_v16, %v1150_v14 }
 0x2b7   :  { %1584 = vmatmul.mubr.bf16.gmra.mrb[28].mxu1 %v1155_v17 }
 0x382   :  { %v1581_v19 = vpop.f32.mrb[24].mxu1 }
 0x383   :  { %v1270_v20 = vadd.f32 %v1581_v19, %v1371_v18  ;;  %v1261_v11 = vpop.f32.mrb[25].mxu1 }
 0x384   :  { %v1262_v21 = vadd.f32 %v1371_v18, %v1261_v11  ;;  %v1582_v22 = vpop.f32.mrb[26].mxu1 }
 0x385   :  { %1294 = vst [vmem:[%s2149_s11 + $0x10] sm:$0xff] %v1270_v20  ;;  %v1273_v15 = vadd.f32 %v1582_v22, %v1371_v18  ;;  %v1264_v23 = vpop.f32.mrb[27].mxu1 }
 0x386   :  { %1292 = vst [vmem:[%s2149_s11] sm:$0xff] %v1262_v21  ;;  %v1265_v24 = vadd.f32 %v1371_v18, %v1264_v23 }
 0x387   :  { %1295 = vst [vmem:[%s2149_s11 + $0x18] sm:$0xff] %v1273_v15 }
 0x388   :  { %1293 = vst [vmem:[%s2149_s11 + $0x8] sm:$0xff] %v1265_v24 }
 0x38a   :  { %v1585_v26 = vpop.f32.mrb[28].mxu1 }
 0x38b   :  { %v1286_v28 = vadd.f32 %v1585_v26, %v1371_v18  ;;  %v1277_v31 = vpop.f32.mrb[29].mxu1 }
 0x38c   :  { %v1278_v12 = vadd.f32 %v1371_v18, %v1277_v31  ;;  %v1586_v32 = vpop.f32.mrb[30].mxu1 }
 0x38d   :  { %1298 = vst [vmem:[%s2149_s11 + $0x30] sm:$0xff] %v1286_v28  ;;  %v1289_v33 = vadd.f32 %v1586_v32, %v1371_v18  ;;  %v1280_v34 = vpop.f32.mrb[31].mxu1 }
 0x38e   :  { %1296 = vst [vmem:[%s2149_s11 + $0x20] sm:$0xff] %v1278_v12  ;;  %v1281_v35 = vadd.f32 %v1371_v18, %v1280_v34 }
 0x38f   :  { %1299 = vst [vmem:[%s2149_s11 + $0x38] sm:$0xff] %v1289_v33 }
 0x390   :  { %1297 = vst [vmem:[%s2149_s11 + $0x28] sm:$0xff] %v1281_v35 }

</bundles_post_ra>
